<compile_context>
chip_gen: v5e
topology: v5e:2x2
jax: 0.10.0
libtpu: 0.0.40
codegen_flags: <defaults>
</compile_context>

<pallas_src>
import jax
import jax.numpy as jnp
from jax import lax
from jax.experimental import pallas as pl
from jax.experimental.pallas import tpu as pltpu


def _round_up(x, m):
    return ((x + m - 1) // m) * m


def graph_predictor_kernel(batch_ref, x_ref, w1_ref, b1_ref, w2_ref, b2_ref,
                           out_ref, acc_ref):
    g = pl.program_id(0)  # graph-tile index (parallel)
    n = pl.program_id(1)  # node-tile index (reduction, arbitrary)

    @pl.when(n == 0)
    def _init():
        acc_ref[...] = jnp.zeros_like(acc_ref)

    # Node MLP on this tile: (TILE_N, F_pad) @ (F_pad, H_pad) + b1 -> relu (f32).
    # NOTE: b1 carries a 1.0 in its last (padding) column, so h[:, -1] == 1.0 and
    # the pooling matmul below also accumulates per-graph node counts on the MXU.
    h = jnp.dot(x_ref[...], w1_ref[...], preferred_element_type=jnp.float32)
    h = jnp.maximum(h + b1_ref[...], 0.0)

    # Per-graph segment sum via a one-hot (TILE_G, TILE_N) matmul.  bf16 operands
    # keep the MXU at full rate and halve vreg/VMEM pressure; accumulation is f32.
    tile_g = acc_ref.shape[0]
    tile_n = batch_ref.shape[1]
    gids = g * tile_g + lax.broadcasted_iota(jnp.int32, (tile_g, tile_n), 0)
    onehot = (gids == batch_ref[...]).astype(jnp.bfloat16)
    acc_ref[...] += jnp.dot(onehot, h.astype(jnp.bfloat16),
                            preferred_element_type=jnp.float32)

    @pl.when(n == pl.num_programs(1) - 1)
    def _finalize():
        acc = acc_ref[...]
        counts = acc[:, acc.shape[1] - 1:]                          # (TILE_G, 1)
        inv = pl.reciprocal(jnp.maximum(counts, 1.0), approx=True)  # EUP slot
        pooled = acc * inv
        out_ref[...] = (
            jnp.dot(pooled, w2_ref[...], preferred_element_type=jnp.float32)
            + b2_ref[...]
        )


def graph_predictor_forward(x, edge_index, batch, params, num_graphs,
                            *, tile_n=512, tile_g=256):
    """x: (N, F) f32; edge_index: (2, E) i32 (unused); batch: (N,) i32 graph ids."""
    del edge_index  # unused in the base GraphPredictor forward
    w1, b1, w2, b2 = params
    n_nodes, dim_f = x.shape
    hidden = w1.shape[1]
    dim_target = w2.shape[1]

    # ---- pad to MXU / lane friendly sizes ----------------------------------
    f_pad = _round_up(max(dim_f, 1), 128)
    h_pad = _round_up(hidden + 1, 128)       # +1 reserves the count column
    t_pad = _round_up(max(dim_target, 1), 128)

    tile_n = min(tile_n, _round_up(n_nodes, 8))
    n_pad = _round_up(n_nodes, tile_n)
    tile_g = min(tile_g, _round_up(num_graphs, 8))
    g_pad = _round_up(num_graphs, tile_g)

    x_p = jnp.zeros((n_pad, f_pad), jnp.float32).at[:n_nodes, :dim_f].set(x)
    # Padding nodes get graph id -1 so they never match any one-hot row.
    batch_p = jnp.full((1, n_pad), -1, jnp.int32).at[0, :n_nodes].set(
        batch.astype(jnp.int32))
    w1_p = jnp.zeros((f_pad, h_pad), jnp.float32).at[:dim_f, :hidden].set(w1)
    b1_p = (jnp.zeros((1, h_pad), jnp.float32)
            .at[:, :hidden].set(b1.reshape(1, hidden))
            .at[0, h_pad - 1].set(1.0))      # ones column -> per-graph counts
    w2_p = jnp.zeros((h_pad, t_pad), jnp.float32).at[:hidden, :dim_target].set(w2)
    b2_p = jnp.zeros((1, t_pad), jnp.float32).at[:, :dim_target].set(
        b2.reshape(1, dim_target))

    grid = (g_pad // tile_g, n_pad // tile_n)
    const_map = lambda g, n: (0, 0)

    out_p = pl.pallas_call(
        graph_predictor_kernel,
        out_shape=jax.ShapeDtypeStruct((g_pad, t_pad), jnp.float32),
        grid_spec=pltpu.PrefetchScalarGridSpec(
            num_scalar_prefetch=0,
            grid=grid,
            in_specs=[
                pl.BlockSpec((1, tile_n), lambda g, n: (0, n)),      # batch ids
                pl.BlockSpec((tile_n, f_pad), lambda g, n: (n, 0)),  # x tile
                pl.BlockSpec((f_pad, h_pad), const_map),             # W1 (resident)
                pl.BlockSpec((1, h_pad), const_map),                 # b1
                pl.BlockSpec((h_pad, t_pad), const_map),             # W2
                pl.BlockSpec((1, t_pad), const_map),                 # b2
            ],
            out_specs=pl.BlockSpec((tile_g, t_pad), lambda g, n: (g, 0)),
            scratch_shapes=[pltpu.VMEM((tile_g, h_pad), jnp.float32)],
        ),
        compiler_params=pltpu.CompilerParams(
            dimension_semantics=("parallel", "arbitrary"),
            vmem_limit_bytes=32 * 1024 * 1024,
        ),
    )(batch_p, x_p, w1_p, b1_p, w2_p, b2_p)

    return out_p[:num_graphs, :dim_target]


def init_params(key, dim_node_features, hidden, dim_target):
    k1, k2, k3, k4 = jax.random.split(key, 4)
    w1 = jax.random.normal(k1, (dim_node_features, hidden), jnp.float32) * 0.1
    b1 = jax.random.normal(k2, (1, hidden), jnp.float32) * 0.01
    w2 = jax.random.normal(k3, (hidden, dim_target), jnp.float32) * 0.1
    b2 = jax.random.normal(k4, (1, dim_target), jnp.float32) * 0.01
    return w1, b1, w2, b2


if __name__ == "__main__":
    # Small deterministic synthetic graph batch.
    dim_node_features = 8
    dim_edge_features = 4   # part of the module signature; unused by base forward
    dim_target = 4
    hidden = 32
    num_nodes = 16
    num_edges = 24
    num_graphs = 2

    key = jax.random.PRNGKey(0)
    k_x, k_e, k_p = jax.random.split(key, 3)

    x = jax.random.normal(k_x, (num_nodes, dim_node_features), jnp.float32)
    edge_index = jax.random.randint(k_e, (2, num_edges), 0, num_nodes, jnp.int32)
    batch = jnp.concatenate(
        [jnp.zeros((num_nodes // 2,), jnp.int32),
         jnp.ones((num_nodes - num_nodes // 2,), jnp.int32)]
    )

    params = init_params(k_p, dim_node_features, hidden, dim_target)

    out = graph_predictor_forward(x, edge_index, batch, params, num_graphs)
    out = jax.block_until_ready(out)

    # Pure-JAX f32 reference of the same readout (kernel pools in bf16 with f32
    # accumulation + approx reciprocal, so tolerances are slightly loosened).
    h_ref = jnp.maximum(x @ params[0] + params[1], 0.0)
    onehot = (jnp.arange(num_graphs)[:, None] == batch[None, :]).astype(jnp.float32)
    pooled_ref = (onehot @ h_ref) / jnp.maximum(onehot.sum(1, keepdims=True), 1.0)
    ref = pooled_ref @ params[2] + params[3]
    assert out.shape == (num_graphs, dim_target)
    assert jnp.allclose(out, ref, atol=1e-2, rtol=1e-2), (out, ref)

    print("KERNEL_OK")
</pallas_src>

<mosaic_0001>
module attributes {stable_mosaic.version = 11 : i64} {
  func.func @graph_predictor_kernel(%arg0: i32, %arg1: i32, %arg2: memref<1x16xi32, #tpu.memory_space<vmem>>, %arg3: memref<16x128xf32, #tpu.memory_space<vmem>>, %arg4: memref<128x128xf32, #tpu.memory_space<vmem>>, %arg5: memref<1x128xf32, #tpu.memory_space<vmem>>, %arg6: memref<128x128xf32, #tpu.memory_space<vmem>>, %arg7: memref<1x128xf32, #tpu.memory_space<vmem>>, %arg8: memref<8x128xf32, #tpu.memory_space<vmem>>, %arg9: memref<8x128xf32, #tpu.memory_space<vmem>>) attributes {dimension_semantics = [#tpu.dimension_semantics<parallel>, #tpu.dimension_semantics<arbitrary>], iteration_bounds = array<i64: 1, 1>, scalar_prefetch = 0 : i64, scratch_operands = 1 : i64, tpu.core_type = #tpu.core_type<tc>, window_params = [{transform_indices = @transform_0, window_bounds = array<i64: 1, 16>}, {transform_indices = @transform_1, window_bounds = array<i64: 16, 128>}, {pipeline_mode = #tpu.pipeline_mode<synchronous>, transform_indices = @transform_2, window_bounds = array<i64: 128, 128>}, {pipeline_mode = #tpu.pipeline_mode<synchronous>, transform_indices = @transform_3, window_bounds = array<i64: 1, 128>}, {pipeline_mode = #tpu.pipeline_mode<synchronous>, transform_indices = @transform_4, window_bounds = array<i64: 128, 128>}, {pipeline_mode = #tpu.pipeline_mode<synchronous>, transform_indices = @transform_5, window_bounds = array<i64: 1, 128>}, {transform_indices = @transform_6, window_bounds = array<i64: 8, 128>}]} {
    %c0_i32 = arith.constant 0 : i32
    %0 = arith.cmpi eq, %arg1, %c0_i32 : i32
    %1 = arith.extui %0 : i1 to i32
    %c0_i32_0 = arith.constant 0 : i32
    %2 = arith.cmpi ne, %1, %c0_i32_0 : i32
    scf.if %2 {
      %cst_16 = arith.constant 0.000000e+00 : f32
      %29 = vector.broadcast %cst_16 : f32 to vector<8x128xf32>
      %c0_17 = arith.constant 0 : index
      %c0_18 = arith.constant 0 : index
      %30 = vector.load %arg9[%c0_17, %c0_18] : memref<8x128xf32, #tpu.memory_space<vmem>>, vector<8x128xf32>
      tpu.vector_store %arg9[%c0_17, %c0_18], %29 {strides = array<i32>} : memref<8x128xf32, #tpu.memory_space<vmem>>, vector<8x128xf32>,
    } else {
    }
    %c0 = arith.constant 0 : index
    %c0_1 = arith.constant 0 : index
    %3 = vector.load %arg3[%c0, %c0_1] : memref<16x128xf32, #tpu.memory_space<vmem>>, vector<16x128xf32>
    %c0_2 = arith.constant 0 : index
    %c0_3 = arith.constant 0 : index
    %4 = vector.load %arg4[%c0_2, %c0_3] : memref<128x128xf32, #tpu.memory_space<vmem>>, vector<128x128xf32>
    %cst = arith.constant dense<0.000000e+00> : vector<16x128xf32>
    %5 = tpu.matmul %3, %4, %cst {dimension_numbers = #tpu.dot_dimension_numbers<[1], [0], [0], [1], [0, 0, 1, 1], [], []>} : vector<16x128xf32>, vector<128x128xf32>, vector<16x128xf32> -> vector<16x128xf32>
    %c0_4 = arith.constant 0 : index
    %c0_5 = arith.constant 0 : index
    %6 = vector.load %arg5[%c0_4, %c0_5] : memref<1x128xf32, #tpu.memory_space<vmem>>, vector<1x128xf32>
    %7 = vector.broadcast %6 : vector<1x128xf32> to vector<16x128xf32>
    %8 = arith.addf %5, %7 : vector<16x128xf32>
    %cst_6 = arith.constant 0.000000e+00 : f32
    %9 = vector.broadcast %cst_6 : f32 to vector<16x128xf32>
    %10 = arith.maximumf %8, %9 : vector<16x128xf32>
    %c8_i32 = arith.constant 8 : i32
    %11 = arith.muli %arg0, %c8_i32 : i32
    %12 = tpu.iota {dimensions = array<i32: 0>} : vector<8x16xi32>
    %13 = vector.broadcast %11 : i32 to vector<8x16xi32>
    %14 = arith.addi %13, %12 : vector<8x16xi32>
    %c0_7 = arith.constant 0 : index
    %c0_8 = arith.constant 0 : index
    %15 = vector.load %arg2[%c0_7, %c0_8] : memref<1x16xi32, #tpu.memory_space<vmem>>, vector<1x16xi32>
    %16 = vector.broadcast %15 : vector<1x16xi32> to vector<8x16xi32>
    %17 = arith.cmpi eq, %14, %16 : vector<8x16xi32>
    %18 = arith.extui %17 : vector<8x16xi1> to vector<8x16xi32>
    %19 = arith.sitofp %18 : vector<8x16xi32> to vector<8x16xf32>
    %20 = arith.truncf %19 : vector<8x16xf32> to vector<8x16xbf16>
    %c0_9 = arith.constant 0 : index
    %c0_10 = arith.constant 0 : index
    %21 = vector.load %arg9[%c0_9, %c0_10] : memref<8x128xf32, #tpu.memory_space<vmem>>, vector<8x128xf32>
    %22 = arith.truncf %10 : vector<16x128xf32> to vector<16x128xbf16>
    %cst_11 = arith.constant dense<0.000000e+00> : vector<8x128xf32>
    %23 = tpu.matmul %20, %22, %cst_11 {dimension_numbers = #tpu.dot_dimension_numbers<[1], [0], [0], [1], [0, 0, 1, 1], [], []>} : vector<8x16xbf16>, vector<16x128xbf16>, vector<8x128xf32> -> vector<8x128xf32>
    %24 = arith.addf %21, %23 : vector<8x128xf32>
    %c0_12 = arith.constant 0 : index
    %c0_13 = arith.constant 0 : index
    %25 = vector.load %arg9[%c0_12, %c0_13] : memref<8x128xf32, #tpu.memory_space<vmem>>, vector<8x128xf32>
    tpu.vector_store %arg9[%c0_12, %c0_13], %24 {strides = array<i32>} : memref<8x128xf32, #tpu.memory_space<vmem>>, vector<8x128xf32>,
    %c0_i32_14 = arith.constant 0 : i32
    %26 = arith.cmpi eq, %arg1, %c0_i32_14 : i32
    %27 = arith.extui %26 : i1 to i32
    %c0_i32_15 = arith.constant 0 : i32
    %28 = arith.cmpi ne, %27, %c0_i32_15 : i32
    scf.if %28 {
      %c0_16 = arith.constant 0 : index
      %c0_17 = arith.constant 0 : index
      %29 = vector.load %arg9[%c0_16, %c0_17] : memref<8x128xf32, #tpu.memory_space<vmem>>, vector<8x128xf32>
      %30 = vector.extract_strided_slice %29 {offsets = [0, 127], sizes = [8, 1], strides = [1, 1]} : vector<8x128xf32> to vector<8x1xf32>
      %cst_18 = arith.constant 1.000000e+00 : f32
      %31 = vector.broadcast %cst_18 : f32 to vector<8x1xf32>
      %32 = arith.maximumf %30, %31 : vector<8x1xf32>
      %33 = tpu.reciprocal %32 {approx = true} : vector<8x1xf32> -> vector<8x1xf32>
      %34 = vector.broadcast %33 : vector<8x1xf32> to vector<8x128xf32>
      %35 = arith.mulf %29, %34 : vector<8x128xf32>
      %c0_19 = arith.constant 0 : index
      %c0_20 = arith.constant 0 : index
      %36 = vector.load %arg6[%c0_19, %c0_20] : memref<128x128xf32, #tpu.memory_space<vmem>>, vector<128x128xf32>
      %cst_21 = arith.constant dense<0.000000e+00> : vector<8x128xf32>
      %37 = tpu.matmul %35, %36, %cst_21 {dimension_numbers = #tpu.dot_dimension_numbers<[1], [0], [0], [1], [0, 0, 1, 1], [], []>} : vector<8x128xf32>, vector<128x128xf32>, vector<8x128xf32> -> vector<8x128xf32>
      %c0_22 = arith.constant 0 : index
      %c0_23 = arith.constant 0 : index
      %38 = vector.load %arg7[%c0_22, %c0_23] : memref<1x128xf32, #tpu.memory_space<vmem>>, vector<1x128xf32>
      %39 = vector.broadcast %38 : vector<1x128xf32> to vector<8x128xf32>
      %40 = arith.addf %37, %39 : vector<8x128xf32>
      %c0_24 = arith.constant 0 : index
      %c0_25 = arith.constant 0 : index
      %41 = vector.load %arg8[%c0_24, %c0_25] : memref<8x128xf32, #tpu.memory_space<vmem>>, vector<8x128xf32>
      tpu.vector_store %arg8[%c0_24, %c0_25], %40 {strides = array<i32>} : memref<8x128xf32, #tpu.memory_space<vmem>>, vector<8x128xf32>,
    } else {
    }
    return
  }
  func.func @transform_0(%arg0: i32, %arg1: i32) -> (i32, i32) {
    %c0_i32 = arith.constant 0 : i32
    %c0_i32_0 = arith.constant 0 : i32
    return %c0_i32, %arg1 : i32, i32
  }
  func.func @transform_1(%arg0: i32, %arg1: i32) -> (i32, i32) {
    %c0_i32 = arith.constant 0 : i32
    %c0_i32_0 = arith.constant 0 : i32
    return %arg1, %c0_i32 : i32, i32
  }
  func.func @transform_2(%arg0: i32, %arg1: i32) -> (i32, i32) {
    %c0_i32 = arith.constant 0 : i32
    %c0_i32_0 = arith.constant 0 : i32
    %c0_i32_1 = arith.constant 0 : i32
    return %c0_i32, %c0_i32_0 : i32, i32
  }
  func.func @transform_3(%arg0: i32, %arg1: i32) -> (i32, i32) {
    %c0_i32 = arith.constant 0 : i32
    %c0_i32_0 = arith.constant 0 : i32
    %c0_i32_1 = arith.constant 0 : i32
    return %c0_i32, %c0_i32_0 : i32, i32
  }
  func.func @transform_4(%arg0: i32, %arg1: i32) -> (i32, i32) {
    %c0_i32 = arith.constant 0 : i32
    %c0_i32_0 = arith.constant 0 : i32
    %c0_i32_1 = arith.constant 0 : i32
    return %c0_i32, %c0_i32_0 : i32, i32
  }
  func.func @transform_5(%arg0: i32, %arg1: i32) -> (i32, i32) {
    %c0_i32 = arith.constant 0 : i32
    %c0_i32_0 = arith.constant 0 : i32
    %c0_i32_1 = arith.constant 0 : i32
    return %c0_i32, %c0_i32_0 : i32, i32
  }
  func.func @transform_6(%arg0: i32, %arg1: i32) -> (i32, i32) {
    %c0_i32 = arith.constant 0 : i32
    %c0_i32_0 = arith.constant 0 : i32
    return %arg0, %c0_i32 : i32, i32
  }
}

</mosaic_0001>

<bundles_post_ra>
// kernel: tpu_custom_call.1
= control target key start
LH: loop header
LB: loop body
LE: loop exit
PB: predicated region body
PF: predicated region fallthrough
CT: control target
= control target key end

     0   :  { %11 = vsyncpa [#allocation4], 0  ;;  %s468_s0 = inlined_call_operand.hbm [shape: s32[1,16], index: 0, kind: input, shape index: {}]   ;;  %s469_s1 = inlined_call_operand.hbm [shape: f32[16,128], index: 1, kind: input, shape index: {}]   ;;  %s470_s2 = inlined_call_operand.hbm [shape: f32[128,128], index: 2, kind: input, shape index: {}]   ;;  %s471_s3 = inlined_call_operand.vmem [shape: f32[1,128], index: 3, kind: input, shape index: {}]   ;;  %s472_s4 = inlined_call_operand.hbm [shape: f32[128,128], index: 4, kind: input, shape index: {}]   ;;  %s473_s5 = inlined_call_operand.vmem [shape: f32[1,128], index: 5, kind: input, shape index: {}]   ;;  %s474_s6 = inlined_call_operand.hbm [shape: f32[8,128], index: 6, kind: output, shape index: {}]  }
   0x1   :  { %12 = vsyncpa [#allocation7], 0 }
   0x2   :  { %13 = vsyncpa [#allocation10], 0  ;;  %s30_s23 = sshll.u32 %s469_s1, 4  ;;  %s31_s23 = int_to_ptr.hbm [resolvable:$true] %s30_s23 }
   0x3   :  { %14 = vsyncpa [#allocation5], 0  ;;  %s403_s24 = smov [#allocation6]   ;;  %s20_s28 = sshll.u32 %s468_s0, 4  ;;  %s21_s28 = int_to_ptr.hbm [resolvable:$true] %s20_s28 }
   0x4   :  { %s32_s25 = sshll.u32 %s403_s24, 4  ;;  %s404_s29 = smov 128   ;;  %s33_s25 = int_to_ptr.vmem [resolvable:$true] %s32_s25 }
   0x5   :  { %s405_s30 = smov 8   ;;  %s406_s7 = smov [#allocation3]  }
   0x6   :  { %38 = dma.hbm_to_vmem [thread:$0]  %s31_s23, 256, %s33_s25, [#allocation7], %s404_s29, %s404_s29, %s405_s30  }
   0x7   :  { %s22_s8 = sshll.u32 %s406_s7, 4  ;;  %s43_s11 = sshll.u32 %s470_s2, 4  ;;  %s23_s8 = int_to_ptr.vmem [resolvable:$true] %s22_s8  ;;  %s44_s11 = int_to_ptr.hbm [resolvable:$true] %s43_s11 }
   0x8   :  { %25 = dma.hbm_to_vmem [thread:$0]  %s21_s28, 16, %s23_s8, [#allocation4]  }
   0x9   :  { %s58_s13 = sshll.u32 %s472_s4, 4  ;;  %s407_s14 = smov [#allocation8]   ;;  %s59_s13 = int_to_ptr.hbm [resolvable:$true] %s58_s13 }
   0xa   :  { %s45_s15 = sshll.u32 %s407_s14, 4  ;;  %s408_s0 = smov [#allocation9]   ;;  %s46_s15 = int_to_ptr.vmem [resolvable:$true] %s45_s15 }
   0xb   :  { %51 = dma.hbm_to_vmem [thread:$0]  %s44_s11, 2048, %s46_s15, [#allocation7], %s404_s29, %s404_s29, %s405_s30  }
   0xc   :  { %s60_s16 = sshll.u32 %s408_s0, 4  ;;  %s61_s16 = int_to_ptr.vmem [resolvable:$true] %s60_s16 }
   0xd   :  { %66 = dma.hbm_to_vmem [thread:$0]  %s59_s13, 2048, %s61_s16, [#allocation10], %s404_s29, %s404_s29, %s405_s30  }
   0xe   :  { %395 = dma.done.wait [#allocation4], 16  }
   0xf   :  { %396 = vsyncadd [#allocation4], 4294967280 }
  0x10   :  { %397 = dma.done.wait [#allocation7], 2304  }
  0x11   :  { %398 = vsyncadd [#allocation7], 4294964992 }
  0x12   :  { %399 = dma.done.wait [#allocation10], 2048  }
  0x13   :  { %400 = vsyncadd [#allocation10], 4294965248  ;;  %v108_v0 = vld [vmem:[#allocation8 + $0x78] sm:$0xff]  ;;  %v107_v1 = vld [vmem:[#allocation8 + $0x70] sm:$0xff]  ;;  %v139_v18 = vlaneseq  ;;  %v409_v28 = vmov 0.0   ;;  %vm151_vm1 = vcmask 130048  }
  0x14   :  { %244 = vmatpush.msra.mxu3 %v108_v0  ;;  %113 = vmatpush.msra.mxu0 %v108_v0  ;;  %v106_v2 = vld [vmem:[#allocation8 + $0x68] sm:$0xff]  ;;  %v105_v3 = vld [vmem:[#allocation8 + $0x60] sm:$0xff]  ;;  %v104_v4 = vld [vmem:[#allocation8 + $0x58] sm:$0xff]  ;;  %v410_v32 = vmov 127   ;;  %s411_s18 = smov [#allocation11]   ;;  %s230_s22 = sshll.u32 %s474_s6, 4  ;;  %s231_s22 = int_to_ptr.hbm [resolvable:$true] %s230_s22 }
  0x15   :  { %v103_v5 = vld [vmem:[#allocation8 + $0x50] sm:$0xff]  ;;  %v102_v6 = vld [vmem:[#allocation8 + $0x48] sm:$0xff]  ;;  %v101_v7 = vld [vmem:[#allocation8 + $0x40] sm:$0xff]  ;;  %v140_v21 = vshrl.u32 %v139_v18, 7  ;;  %269 = vset.pattern.permute.xlu0 %v410_v32  ;;  %s228_s19 = sshll.u32 %s411_s18, 4  ;;  %s229_s19 = int_to_ptr.vmem [resolvable:$true] %s228_s19 }
  0x16   :  { %245 = vmatpush.msra.mxu3 %v107_v1  ;;  %114 = vmatpush.msra.mxu0 %v107_v1  ;;  %v100_v8 = vld [vmem:[#allocation8 + $0x38] sm:$0xff]  ;;  %v99_v9 = vld [vmem:[#allocation8 + $0x30] sm:$0xff]  ;;  %v98_v10 = vld [vmem:[#allocation8 + $0x28] sm:$0xff] }
  0x17   :  { %v97_v11 = vld [vmem:[#allocation8 + $0x20] sm:$0xff]  ;;  %v96_v12 = vld [vmem:[#allocation8 + $0x18] sm:$0xff]  ;;  %v95_v13 = vld [vmem:[#allocation8 + $0x10] sm:$0xff] }
  0x18   :  { %246 = vmatpush.msra.mxu3 %v106_v2  ;;  %115 = vmatpush.msra.mxu0 %v106_v2  ;;  %v94_v14 = vld [vmem:[#allocation8 + $0x8] sm:$0xff]  ;;  %v93_v15 = vld [vmem:[#allocation8] sm:$0xff]  ;;  %v92_v16 = vld [vmem:[#allocation6 + $0x8] sm:$0xff] }
  0x19   :  { %v91_v17 = vld [vmem:[#allocation6] sm:$0xff]  ;;  %v270_v19 = vld [vmem:[%s471_s3] ss:$0 sm:$0xff]  ;;  %v197_v33 = vld [vmem:[#allocation9 + $0x78] sm:$0xff] }
  0x1a   :  { %247 = vmatpush.msra.mxu3 %v105_v3  ;;  %116 = vmatpush.msra.mxu0 %v105_v3  ;;  %v271_v22 = vld [vmem:[#allocation3] ss:$0 sm:$0xff]  ;;  %v196_v34 = vld [vmem:[#allocation9 + $0x70] sm:$0xff]  ;;  %v194_v36 = vld [vmem:[#allocation9 + $0x60] sm:$0xff] }
  0x1b   :  { %vm145_vm0 = vcmp.eq.s32.totalorder %v140_v21, %v271_v22  ;;  %202 = vmatpush.msra.mxu2 %v197_v33  ;;  %v195_v35 = vld [vmem:[#allocation9 + $0x68] sm:$0xff]  ;;  %v193_v37 = vld [vmem:[#allocation9 + $0x58] sm:$0xff]  ;;  %v192_v38 = vld [vmem:[#allocation9 + $0x50] sm:$0xff] }
  0x1c   :  { %248 = vmatpush.msra.mxu3 %v104_v4  ;;  %117 = vmatpush.msra.mxu0 %v104_v4  ;;  %v242_v29 = vsel %vm145_vm0, 1.0, %v409_v28  ;;  %v191_v39 = vld [vmem:[#allocation9 + $0x48] sm:$0xff]  ;;  %v190_v40 = vld [vmem:[#allocation9 + $0x40] sm:$0xff]  ;;  %v189_v41 = vld [vmem:[#allocation9 + $0x38] sm:$0xff] }
  0x1d   :  { %v148_v31 = vpack.c.bf16 %v242_v29, %v242_v29  ;;  %203 = vmatpush.msra.mxu2 %v196_v34  ;;  %v188_v42 = vld [vmem:[#allocation9 + $0x30] sm:$0xff]  ;;  %v187_v43 = vld [vmem:[#allocation9 + $0x28] sm:$0xff]  ;;  %v186_v44 = vld [vmem:[#allocation9 + $0x20] sm:$0xff] }
  0x1e   :  { %249 = vmatpush.msra.mxu3 %v103_v5  ;;  %118 = vmatpush.msra.mxu0 %v103_v5  ;;  %v185_v46 = vld [vmem:[#allocation9 + $0x18] sm:$0xff]  ;;  %v184_v48 = vld [vmem:[#allocation9 + $0x10] sm:$0xff]  ;;  %v183_v49 = vld [vmem:[#allocation9 + $0x8] sm:$0xff] }
  0x1f   :  { %204 = vmatpush.msra.mxu2 %v195_v35  ;;  %v182_v52 = vld [vmem:[#allocation9] sm:$0xff]  ;;  %v272_v55 = vld [vmem:[%s473_s5] ss:$0 sm:$0xff] }
  0x20   :  { %250 = vmatpush.msra.mxu3 %v102_v6  ;;  %119 = vmatpush.msra.mxu0 %v102_v6 }
  0x21   :  { %205 = vmatpush.msra.mxu2 %v194_v36 }
  0x22   :  { %251 = vmatpush.msra.mxu3 %v101_v7  ;;  %120 = vmatpush.msra.mxu0 %v101_v7 }
  0x23   :  { %206 = vmatpush.msra.mxu2 %v193_v37 }
  0x24   :  { %252 = vmatpush.msra.mxu3 %v100_v8  ;;  %121 = vmatpush.msra.mxu0 %v100_v8 }
  0x25   :  { %207 = vmatpush.msra.mxu2 %v192_v38 }
  0x26   :  { %253 = vmatpush.msra.mxu3 %v99_v9  ;;  %122 = vmatpush.msra.mxu0 %v99_v9 }
  0x27   :  { %208 = vmatpush.msra.mxu2 %v191_v39 }
  0x28   :  { %254 = vmatpush.msra.mxu3 %v98_v10  ;;  %123 = vmatpush.msra.mxu0 %v98_v10 }
  0x29   :  { %209 = vmatpush.msra.mxu2 %v190_v40 }
  0x2a   :  { %255 = vmatpush.msra.mxu3 %v97_v11  ;;  %124 = vmatpush.msra.mxu0 %v97_v11 }
  0x2b   :  { %210 = vmatpush.msra.mxu2 %v189_v41 }
  0x2c   :  { %256 = vmatpush.msra.mxu3 %v96_v12  ;;  %125 = vmatpush.msra.mxu0 %v96_v12 }
  0x2d   :  { %211 = vmatpush.msra.mxu2 %v188_v42 }
  0x2e   :  { %257 = vmatpush.msra.mxu3 %v95_v13  ;;  %126 = vmatpush.msra.mxu0 %v95_v13 }
  0x2f   :  { %212 = vmatpush.msra.mxu2 %v187_v43 }
  0x30   :  { %258 = vmatpush.msra.mxu3 %v94_v14  ;;  %127 = vmatpush.msra.mxu0 %v94_v14 }
  0x31   :  { %213 = vmatpush.msra.mxu2 %v186_v44 }
  0x32   :  { %259 = vmatpush.msra.mxu3 %v93_v15  ;;  %128 = vmatpush.msra.mxu0 %v93_v15 }
  0x33   :  { %132 = vmatmul.f32.vlgmr.msra.gmra.mxu3 %v92_v16  ;;  %129 = vmatmul.f32.vlgmr.msra.gmra.mxu0 %v91_v17 }
  0x34   :  { %214 = vmatpush.msra.mxu2 %v185_v46 }
  0x36   :  { %215 = vmatpush.msra.mxu2 %v184_v48 }
  0x38   :  { %216 = vmatpush.msra.mxu2 %v183_v49 }
  0x3a   :  { %217 = vmatpush.msra.mxu2 %v182_v52 }
  0xb0   :  { %v130_v20 = vpop.f32.mrf.mxu0 }
  0xb1   :  { %v131_v23 = vadd.f32 %v270_v19, %v130_v20 }
  0xb3   :  { %v136_v25 = vmax.f32 %v131_v23, 0.0 }
  0xb6   :  { %v133_v24 = vpop.f32.mrf.mxu3 }
  0xb7   :  { %v134_v26 = vadd.f32 %v270_v19, %v133_v24 }
  0xb9   :  { %v137_v27 = vmax.f32 %v134_v26, 0.0 }
  0xbb   :  { %v150_v30 = vpack.c.bf16 %v137_v27, %v136_v25 }
  0xbd   :  { %162 = vmatpush.bf16.msra.mxu1 %v150_v30 }
  0xc0   :  { %243 = vmatmul.msk.bf16.vlgmr.msra.gmra.mxu1 %vm151_vm1, %v148_v31 }
 0x13d   :  { %v164_v45 = vpop.f32.mrf.mxu1 }
 0x13e   :  { %v174_v47 = vmax.f32 %v164_v45, 1.0 }
 0x140   :  { %273 = vrcp.f32 %v174_v47 }
 0x145   :  { %v166_v50 = vpop.f32.mrf.mxu1 }
 0x146   :  { %v274_v51 = vpop.eup %273 }
 0x147   :  { %178 = vperm.xlu0 %269, %v274_v51  }
 0x1b9   :  { %v179_v53 = vpop.permute.xlu0 %178 }
 0x1ba   :  { %v181_v54 = vmul.f32 %v179_v53, %v164_v45 }
 0x1bc   :  { %218 = vmatmul.f32.vlgmr.msra.gmra.mxu2 %v181_v54 }
 0x23f   :  { %v219_v56 = vpop.f32.mrf.mxu2 }
 0x240   :  { %v220_v57 = vadd.f32 %v272_v55, %v219_v56 }
 0x242   :  { %222 = vst [vmem:[#allocation11] sm:$0xff] %v220_v57 }
 0x243   :  { %233 = dma.vmem_to_hbm [thread:$0]  %s229_s19, 128, %s231_s22, [#allocation5]  }
 0x244   :  { %401 = dma.done.wait [#allocation5], 128  }
 0x245   :  { %402 = vsyncadd [#allocation5], 4294967168 }
 0x246   :  { %238 = vsyncpa [#allocation4], 1 }
 0x247   :  { %239 = vsyncpa [#allocation7], 1 }
 0x248   :  { %240 = vsyncpa [#allocation10], 1 }
 0x249   :  { %241 = vsyncpa [#allocation5], 1 }

</bundles_post_ra>
